<compile_context>
chip_gen: v5e
topology: v5e:2x2
jax: 0.10.0
libtpu: 0.0.40
codegen_flags: <defaults>
</compile_context>

<pallas_src>
import functools
import math

import jax
import jax.numpy as jnp
from jax.experimental import pallas as pl
from jax.experimental.pallas import tpu as pltpu

_LOG2 = math.log(2.0)


# --------------------------------------------------------------------------
# Kernel
# --------------------------------------------------------------------------
def affine_flow_kernel(z_ref, x_ref, w1_ref, b1_ref, w2_ref, b2_ref,
                       out_ref, *, d_out):
    z = z_ref[...]
    x = x_ref[...]

    # fused layer 1 of both eta nets (compact weights, un-tiled Z)
    h = jnp.maximum(
        jnp.dot(z, w1_ref[...], preferred_element_type=jnp.float32) + b1_ref[...],
        0.0)
    # fused layer 2 -> [e1 | e2_raw]
    eta = jnp.dot(h, w2_ref[...], preferred_element_type=jnp.float32) + b2_ref[...]
    e1 = eta[:, :d_out]
    c = jnp.clip(eta[:, d_out:], -4.0, 4.0)

    # elementwise flow math (algebraically identical to the torch forward)
    neg_exp_c = jnp.exp(-c)            # = -1/e2
    t = 0.5 * e1 * neg_exp_c           # = -e1/(2*e2)
    s = -0.5 * (_LOG2 + c)             # = log(-1/(2*e2))/2
    inv_sigma = jnp.exp(-s)            # = 1/exp(s) = sqrt(-2*e2)
    e = (x - t) * inv_sigma
    xs = x * inv_sigma
    ll = e1 * x - 0.5 * xs * xs - 0.5 * e1 * t - s   # e2*x^2 = -0.5*xs^2, log(sqrt(-2e2)) = -s

    out_ref[...] = jnp.concatenate([e, ll, s, t], axis=-1)


# --------------------------------------------------------------------------
# Wrapper
# --------------------------------------------------------------------------
def affine_flow(X, Z, packed_params, d_out, *, batch_tile=512):
    """Run the fused AffineFlow forward. Returns (e, ll, s, t)."""
    B, d_in = Z.shape
    w1p, b1p, w2p, b2p = packed_params

    # Batch tile: biggest tile <= batch_tile (sized with v7x's 64 MiB VMEM in
    # mind; activations here are tiny so 512 rows is comfortably within budget).
    tb = B if B <= batch_tile else batch_tile
    grid = (pl.cdiv(B, tb),)

    kernel = functools.partial(affine_flow_kernel, d_out=d_out)

    out = pl.pallas_call(
        kernel,
        grid=grid,
        in_specs=[
            pl.BlockSpec((tb, d_in), lambda i: (i, 0)),    # Z tile
            pl.BlockSpec((tb, d_out), lambda i: (i, 0)),   # X tile
            pl.BlockSpec(w1p.shape, lambda i: (0, 0)),     # resident weights
            pl.BlockSpec(b1p.shape, lambda i: (0, 0)),
            pl.BlockSpec(w2p.shape, lambda i: (0, 0)),
            pl.BlockSpec(b2p.shape, lambda i: (0, 0)),
        ],
        out_specs=pl.BlockSpec((tb, 4 * d_out), lambda i: (i, 0)),
        out_shape=jax.ShapeDtypeStruct((B, 4 * d_out), jnp.float32),
        compiler_params=pltpu.CompilerParams(
            dimension_semantics=("parallel",)),
    )(Z, X, w1p, b1p, w2p, b2p)

    e = out[:, 0 * d_out:1 * d_out]
    ll = out[:, 1 * d_out:2 * d_out]
    s = out[:, 2 * d_out:3 * d_out]
    t = out[:, 3 * d_out:4 * d_out]
    return e, ll, s, t


# --------------------------------------------------------------------------
# Parameter construction (torch-layout masked MLP) + one-time packing
# --------------------------------------------------------------------------
def init_masked_mlp(key, d_in, d_out, dh):
    """Grouped-mask MLP as in the torch module: block-diagonal masked dense
    layers d_in*d_out -> dh*d_out -> d_out (masks baked into the weights)."""
    DinD, DHD = d_in * d_out, dh * d_out
    k1, k2, k3, k4 = jax.random.split(key, 4)
    w1 = jax.random.normal(k1, (DinD, DHD), jnp.float32) / jnp.sqrt(jnp.float32(d_in))
    b1 = 0.1 * jax.random.normal(k2, (1, DHD), jnp.float32)
    w2 = jax.random.normal(k3, (DHD, d_out), jnp.float32) / jnp.sqrt(jnp.float32(dh))
    b2 = 0.1 * jax.random.normal(k4, (1, d_out), jnp.float32)
    g_in = jnp.arange(DinD) // d_in
    g_hid = jnp.arange(DHD) // dh
    g_out = jnp.arange(d_out)
    mask1 = (g_in[:, None] == g_hid[None, :]).astype(jnp.float32)
    mask2 = (g_hid[:, None] == g_out[None, :]).astype(jnp.float32)
    return w1 * mask1, b1, w2 * mask2, b2


def pack_params(params_eta1, params_eta2, d_in, d_out, dh):
    """One-time transform of masked torch-layout weights into the fused,
    compact layout consumed by the kernel."""
    DHD = dh * d_out

    def compact_w1(w1):
        # keep only the nonzero diagonal blocks and stack them horizontally:
        # (d_in*d_out, dh*d_out) -> (d_in, dh*d_out)
        blocks = [w1[g * d_in:(g + 1) * d_in, g * dh:(g + 1) * dh]
                  for g in range(d_out)]
        return jnp.concatenate(blocks, axis=1)

    w1a, b1a, w2a, b2a = params_eta1
    w1b, b1b, w2b, b2b = params_eta2

    w1p = jnp.concatenate([compact_w1(w1a), compact_w1(w1b)], axis=1)  # (d_in, 2*DHD)
    b1p = jnp.concatenate([b1a, b1b], axis=1)                          # (1, 2*DHD)
    w2p = jnp.zeros((2 * DHD, 2 * d_out), jnp.float32)
    w2p = w2p.at[:DHD, :d_out].set(w2a)
    w2p = w2p.at[DHD:, d_out:].set(w2b)                                # (2*DHD, 2*d_out)
    b2p = jnp.concatenate([b2a, b2b], axis=1)                          # (1, 2*d_out)
    return w1p, b1p, w2p, b2p


# --------------------------------------------------------------------------
# Pure-JAX reference (the ORIGINAL masked / Z.repeat formulation)
# --------------------------------------------------------------------------
def affine_flow_ref(X, Z, params, d_out):
    Zr = jnp.tile(Z, (1, d_out))
    (w1a, b1a, w2a, b2a), (w1b, b1b, w2b, b2b) = params
    e1 = jnp.maximum(Zr @ w1a + b1a, 0.0) @ w2a + b2a
    e2 = -jnp.exp(jnp.clip(jnp.maximum(Zr @ w1b + b1b, 0.0) @ w2b + b2b, -4.0, 4.0))
    t = -e1 / (2.0 * e2)
    s = jnp.log(-1.0 / (2.0 * e2)) / 2.0
    e = (X - t) / jnp.exp(s)
    ll = e1 * X + e2 * X * X + e1 * e1 / (4.0 * e2) + jnp.log(jnp.sqrt(-2.0 * e2))
    return e, ll, s, t


if __name__ == "__main__":
    B, d_in, d_out, dh = 8, 4, 4, 8

    key = jax.random.PRNGKey(0)
    kx, kz, k_eta1, k_eta2 = jax.random.split(key, 4)
    X = jax.random.normal(kx, (B, d_out), jnp.float32)
    Z = jax.random.normal(kz, (B, d_in), jnp.float32)

    p1 = init_masked_mlp(k_eta1, d_in, d_out, dh)
    p2 = init_masked_mlp(k_eta2, d_in, d_out, dh)
    packed = pack_params(p1, p2, d_in, d_out, dh)

    e, ll, s, t = affine_flow(X, Z, packed, d_out)
    jax.block_until_ready((e, ll, s, t))

    e_r, ll_r, s_r, t_r = affine_flow_ref(X, Z, (p1, p2), d_out)
    for got, ref in ((e, e_r), (ll, ll_r), (s, s_r), (t, t_r)):
        assert jnp.allclose(got, ref, atol=2e-4, rtol=2e-4), "mismatch vs reference"

    print("KERNEL_OK")
</pallas_src>

<mosaic_0001>
module attributes {stable_mosaic.version = 11 : i64} {
  func.func @affine_flow_kernel(%arg0: i32, %arg1: memref<8x4xf32, #tpu.memory_space<vmem>>, %arg2: memref<8x4xf32, #tpu.memory_space<vmem>>, %arg3: memref<4x64xf32, #tpu.memory_space<vmem>>, %arg4: memref<1x64xf32, #tpu.memory_space<vmem>>, %arg5: memref<64x8xf32, #tpu.memory_space<vmem>>, %arg6: memref<1x8xf32, #tpu.memory_space<vmem>>, %arg7: memref<8x16xf32, #tpu.memory_space<vmem>>) attributes {dimension_semantics = [#tpu.dimension_semantics<parallel>], iteration_bounds = array<i64: 1>, scalar_prefetch = 0 : i64, scratch_operands = 0 : i64, tpu.core_type = #tpu.core_type<tc>, window_params = [{transform_indices = @transform_0, window_bounds = array<i64: 8, 4>}, {transform_indices = @transform_1, window_bounds = array<i64: 8, 4>}, {pipeline_mode = #tpu.pipeline_mode<synchronous>, transform_indices = @transform_2, window_bounds = array<i64: 4, 64>}, {pipeline_mode = #tpu.pipeline_mode<synchronous>, transform_indices = @transform_3, window_bounds = array<i64: 1, 64>}, {pipeline_mode = #tpu.pipeline_mode<synchronous>, transform_indices = @transform_4, window_bounds = array<i64: 64, 8>}, {pipeline_mode = #tpu.pipeline_mode<synchronous>, transform_indices = @transform_5, window_bounds = array<i64: 1, 8>}, {transform_indices = @transform_6, window_bounds = array<i64: 8, 16>}]} {
    %c0 = arith.constant 0 : index
    %c0_0 = arith.constant 0 : index
    %0 = vector.load %arg1[%c0, %c0_0] : memref<8x4xf32, #tpu.memory_space<vmem>>, vector<8x4xf32>
    %c0_1 = arith.constant 0 : index
    %c0_2 = arith.constant 0 : index
    %1 = vector.load %arg2[%c0_1, %c0_2] : memref<8x4xf32, #tpu.memory_space<vmem>>, vector<8x4xf32>
    %c0_3 = arith.constant 0 : index
    %c0_4 = arith.constant 0 : index
    %2 = vector.load %arg3[%c0_3, %c0_4] : memref<4x64xf32, #tpu.memory_space<vmem>>, vector<4x64xf32>
    %cst = arith.constant dense<0.000000e+00> : vector<8x64xf32>
    %3 = tpu.matmul %0, %2, %cst {dimension_numbers = #tpu.dot_dimension_numbers<[1], [0], [0], [1], [0, 0, 1, 1], [], []>} : vector<8x4xf32>, vector<4x64xf32>, vector<8x64xf32> -> vector<8x64xf32>
    %c0_5 = arith.constant 0 : index
    %c0_6 = arith.constant 0 : index
    %4 = vector.load %arg4[%c0_5, %c0_6] : memref<1x64xf32, #tpu.memory_space<vmem>>, vector<1x64xf32>
    %5 = vector.broadcast %4 : vector<1x64xf32> to vector<8x64xf32>
    %6 = arith.addf %3, %5 : vector<8x64xf32>
    %cst_7 = arith.constant 0.000000e+00 : f32
    %7 = vector.broadcast %cst_7 : f32 to vector<8x64xf32>
    %8 = arith.maximumf %6, %7 : vector<8x64xf32>
    %c0_8 = arith.constant 0 : index
    %c0_9 = arith.constant 0 : index
    %9 = vector.load %arg5[%c0_8, %c0_9] : memref<64x8xf32, #tpu.memory_space<vmem>>, vector<64x8xf32>
    %cst_10 = arith.constant dense<0.000000e+00> : vector<8x8xf32>
    %10 = tpu.matmul %8, %9, %cst_10 {dimension_numbers = #tpu.dot_dimension_numbers<[1], [0], [0], [1], [0, 0, 1, 1], [], []>} : vector<8x64xf32>, vector<64x8xf32>, vector<8x8xf32> -> vector<8x8xf32>
    %c0_11 = arith.constant 0 : index
    %c0_12 = arith.constant 0 : index
    %11 = vector.load %arg6[%c0_11, %c0_12] : memref<1x8xf32, #tpu.memory_space<vmem>>, vector<1x8xf32>
    %12 = vector.broadcast %11 : vector<1x8xf32> to vector<8x8xf32>
    %13 = arith.addf %10, %12 : vector<8x8xf32>
    %14 = vector.extract_strided_slice %13 {offsets = [0, 0], sizes = [8, 4], strides = [1, 1]} : vector<8x8xf32> to vector<8x4xf32>
    %15 = vector.extract_strided_slice %13 {offsets = [0, 4], sizes = [8, 4], strides = [1, 1]} : vector<8x8xf32> to vector<8x4xf32>
    %cst_13 = arith.constant -4.000000e+00 : f32
    %cst_14 = arith.constant 4.000000e+00 : f32
    %16 = vector.broadcast %cst_13 : f32 to vector<8x4xf32>
    %17 = arith.maximumf %16, %15 : vector<8x4xf32>
    %18 = vector.broadcast %cst_14 : f32 to vector<8x4xf32>
    %19 = arith.minimumf %18, %17 : vector<8x4xf32>
    %cst_15 = arith.constant 0.000000e+00 : f32
    %20 = vector.broadcast %cst_15 : f32 to vector<8x4xf32>
    %21 = arith.subf %20, %19 : vector<8x4xf32>
    %22 = math.exp %21 : vector<8x4xf32>
    %cst_16 = arith.constant 5.000000e-01 : f32
    %23 = vector.broadcast %cst_16 : f32 to vector<8x4xf32>
    %24 = arith.mulf %23, %14 : vector<8x4xf32>
    %25 = arith.mulf %24, %22 : vector<8x4xf32>
    %cst_17 = arith.constant 0.693147182 : f32
    %26 = vector.broadcast %cst_17 : f32 to vector<8x4xf32>
    %27 = arith.addf %26, %19 : vector<8x4xf32>
    %cst_18 = arith.constant -5.000000e-01 : f32
    %28 = vector.broadcast %cst_18 : f32 to vector<8x4xf32>
    %29 = arith.mulf %28, %27 : vector<8x4xf32>
    %cst_19 = arith.constant 0.000000e+00 : f32
    %30 = vector.broadcast %cst_19 : f32 to vector<8x4xf32>
    %31 = arith.subf %30, %29 : vector<8x4xf32>
    %32 = math.exp %31 : vector<8x4xf32>
    %33 = arith.subf %1, %25 : vector<8x4xf32>
    %34 = arith.mulf %33, %32 : vector<8x4xf32>
    %35 = arith.mulf %1, %32 : vector<8x4xf32>
    %36 = arith.mulf %14, %1 : vector<8x4xf32>
    %cst_20 = arith.constant 5.000000e-01 : f32
    %37 = vector.broadcast %cst_20 : f32 to vector<8x4xf32>
    %38 = arith.mulf %37, %35 : vector<8x4xf32>
    %39 = arith.mulf %38, %35 : vector<8x4xf32>
    %40 = arith.subf %36, %39 : vector<8x4xf32>
    %cst_21 = arith.constant 5.000000e-01 : f32
    %41 = vector.broadcast %cst_21 : f32 to vector<8x4xf32>
    %42 = arith.mulf %41, %14 : vector<8x4xf32>
    %43 = arith.mulf %42, %25 : vector<8x4xf32>
    %44 = arith.subf %40, %43 : vector<8x4xf32>
    %45 = arith.subf %44, %29 : vector<8x4xf32>
    %46 = tpu.concatenate %34, %45, %29, %25 in 1 : vector<8x4xf32>, vector<8x4xf32>, vector<8x4xf32>, vector<8x4xf32> -> vector<8x16xf32>
    %c0_22 = arith.constant 0 : index
    %c0_23 = arith.constant 0 : index
    %47 = vector.load %arg7[%c0_22, %c0_23] : memref<8x16xf32, #tpu.memory_space<vmem>>, vector<8x16xf32>
    tpu.vector_store %arg7[%c0_22, %c0_23], %46 {strides = array<i32>} : memref<8x16xf32, #tpu.memory_space<vmem>>, vector<8x16xf32>,
    return
  }
  func.func @transform_0(%arg0: i32) -> (i32, i32) {
    %c0_i32 = arith.constant 0 : i32
    %c0_i32_0 = arith.constant 0 : i32
    return %arg0, %c0_i32 : i32, i32
  }
  func.func @transform_1(%arg0: i32) -> (i32, i32) {
    %c0_i32 = arith.constant 0 : i32
    %c0_i32_0 = arith.constant 0 : i32
    return %arg0, %c0_i32 : i32, i32
  }
  func.func @transform_2(%arg0: i32) -> (i32, i32) {
    %c0_i32 = arith.constant 0 : i32
    %c0_i32_0 = arith.constant 0 : i32
    %c0_i32_1 = arith.constant 0 : i32
    return %c0_i32, %c0_i32_0 : i32, i32
  }
  func.func @transform_3(%arg0: i32) -> (i32, i32) {
    %c0_i32 = arith.constant 0 : i32
    %c0_i32_0 = arith.constant 0 : i32
    %c0_i32_1 = arith.constant 0 : i32
    return %c0_i32, %c0_i32_0 : i32, i32
  }
  func.func @transform_4(%arg0: i32) -> (i32, i32) {
    %c0_i32 = arith.constant 0 : i32
    %c0_i32_0 = arith.constant 0 : i32
    %c0_i32_1 = arith.constant 0 : i32
    return %c0_i32, %c0_i32_0 : i32, i32
  }
  func.func @transform_5(%arg0: i32) -> (i32, i32) {
    %c0_i32 = arith.constant 0 : i32
    %c0_i32_0 = arith.constant 0 : i32
    %c0_i32_1 = arith.constant 0 : i32
    return %c0_i32, %c0_i32_0 : i32, i32
  }
  func.func @transform_6(%arg0: i32) -> (i32, i32) {
    %c0_i32 = arith.constant 0 : i32
    %c0_i32_0 = arith.constant 0 : i32
    return %arg0, %c0_i32 : i32, i32
  }
}

</mosaic_0001>

<bundles_post_ra>
// kernel: tpu_custom_call.1
= control target key start
LH: loop header
LB: loop body
LE: loop exit
PB: predicated region body
PF: predicated region fallthrough
CT: control target
= control target key end

     0   :  { %vm35_vm0 = vcmask 1043456   ;;  %vm31_vm1 = vcmask 31744   ;;  %s289_s0 = inlined_call_operand.vmem [shape: f32[8,4], index: 0, kind: input, shape index: {}]   ;;  %s290_s1 = inlined_call_operand.vmem [shape: f32[8,4], index: 1, kind: input, shape index: {}]   ;;  %s291_s2 = inlined_call_operand.vmem [shape: f32[4,64], index: 2, kind: input, shape index: {}]   ;;  %s292_s3 = inlined_call_operand.vmem [shape: f32[1,64], index: 3, kind: input, shape index: {}]   ;;  %s293_s4 = inlined_call_operand.vmem [shape: f32[64,8], index: 4, kind: input, shape index: {}]   ;;  %s294_s5 = inlined_call_operand.vmem [shape: f32[1,8], index: 5, kind: input, shape index: {}]   ;;  %s295_s6 = inlined_call_operand.hbm [shape: f32[8,16], index: 6, kind: output, shape index: {}]  }
   0x1   :  { %v26_v0 = vld [vmem:[%s291_s2] sm:$0xf]  ;;  %v67_v2 = vld [vmem:[%s293_s4 + $0x38] sm:$0xff]  ;;  %v66_v3 = vld [vmem:[%s293_s4 + $0x30] sm:$0xff] }
   0x2   :  { %v24_v1 = vld [vmem:[%s289_s0] sm:$0xff]  ;;  %164 = vmatpush.msk.msra.mxu0 %vm35_vm0, %v26_v0  ;;  %84 = vmatpush.msra.mxu1 %v67_v2  ;;  %v65_v4 = vld [vmem:[%s293_s4 + $0x28] sm:$0xff] }
   0x3   :  { %165 = vmatmul.msk.f32.vlgmr.msra.gmra.mxu0 %vm31_vm1, %v24_v1 }
   0x4   :  { %85 = vmatpush.msra.mxu1 %v66_v3 }
   0x5   :  { %11 = vsyncpa [#allocation3], 0  ;;  %v64_v5 = vld [vmem:[%s293_s4 + $0x20] sm:$0xff]  ;;  %v63_v6 = vld [vmem:[%s293_s4 + $0x18] sm:$0xff]  ;;  %vm72_vm2 = vcmask 523264   ;;  %s205_s19 = smov 124  }
   0x6   :  { %86 = vmatpush.msra.mxu1 %v65_v4  ;;  %v62_v7 = vld [vmem:[%s293_s4 + $0x10] sm:$0xff]  ;;  %v61_v8 = vld [vmem:[%s293_s4 + $0x8] sm:$0xff]  ;;  %v60_v9 = vld [vmem:[%s293_s4] sm:$0xff]  ;;  %s204_s4 = smov 4   ;;  %s206_s20 = smov 12   ;;  %vm142_vm3 = vcmask 64512  }
   0x7   :  { %v172_v10 = vld [vmem:[%s292_s3] ss:$0 sm:$0xff]  ;;  %s155_s24 = sshll.u32 %s295_s6, 4  ;;  %vm144_vm4 = vcmask 97280   ;;  %vm146_vm5 = vcmask 130048   ;;  %s156_s24 = int_to_ptr.hbm [resolvable:$true] %s155_s24 }
   0x8   :  { %87 = vmatpush.msra.mxu1 %v64_v5  ;;  %v173_v14 = vld [vmem:[%s294_s5] ss:$0 sm:$0xff] }
   0x9   :  { %v25_v26 = vld [vmem:[%s290_s1] sm:$0xff]  ;;  %s207_s1 = smov [#allocation2]  }
   0xa   :  { %88 = vmatpush.msra.mxu1 %v63_v6  ;;  %s153_s21 = sshll.u32 %s207_s1, 4  ;;  %s154_s21 = int_to_ptr.vmem [resolvable:$true] %s153_s21 }
   0xc   :  { %89 = vmatpush.msra.mxu1 %v62_v7 }
   0xe   :  { %90 = vmatpush.msra.mxu1 %v61_v8 }
  0x10   :  { %91 = vmatpush.msra.mxu1 %v60_v9 }
  0x80   :  { %v56_v11 = vpop.f32.mrf.mxu0 }
  0x81   :  { %v57_v12 = vadd.f32 %v172_v10, %v56_v11 }
  0x83   :  { %v59_v13 = vmax.f32 %v57_v12, 0.0 }
  0x85   :  { %166 = vmatmul.msk.f32.vlgmr.msra.gmra.mxu1 %vm72_vm2, %v59_v13 }
 0x102   :  { %v93_v15 = vpop.f32.mrf.mxu1 }
 0x103   :  { %v94_v16 = vadd.f32 %v173_v14, %v93_v15 }
 0x105   :  { %v167_v17 = vclamps-f32 %v94_v16, 4.0  ;;  %v101_v31 = vmul.f32 0.5, %v94_v16  ;;  %v119_v33 = vmul.f32 %v94_v16, %v25_v26 }
 0x107   :  { %v107_v18 = vadd.f32 0.6931472, %v167_v17  ;;  %v98_v22 = vsub.f32 0.0, %v167_v17 }
 0x109   :  { %v108_v19 = vmul.f32 -0.5, %v107_v18  ;;  %v99_v23 = vmul.f32 1.442695, %v98_v22 }
 0x10b   :  { %134 = vrot.lane.b32.xlu2 %v108_v19, %s204_s4  ;;  %126 = vrot.lane.b32.xlu1 %v108_v19, %s205_s19  ;;  %v109_v20 = vsub.f32 0.0, %v108_v19 }
 0x10d   :  { %v110_v21 = vmul.f32 1.442695, %v109_v20 }
 0x10f   :  { %174 = vpow2.f32 %v110_v21 }
 0x110   :  { %176 = vpow2.f32 %v99_v23 }
 0x115   :  { %v175_v24 = vpop.eup %174 }
 0x116   :  { %114 = vrot.lane.b32.xlu0 %v175_v24, %s205_s19  ;;  %v177_v25 = vpop.eup %176 }
 0x11e   :  { %103 = vrot.lane.b32.xlu0 %v177_v25, %s205_s19 }
 0x165   :  { %v135_v42 = vpop.permute.xlu2 %134 }
 0x17d   :  { %v127_v40 = vpop.permute.xlu1 %126 }
 0x188   :  { %v115_v27 = vpop.permute.xlu0 %114 }
 0x189   :  { %v118_v28 = vmul.f32 %v115_v27, %v25_v26 }
 0x18b   :  { %v120_v29 = vmul.f32 0.5, %v118_v28 }
 0x18d   :  { %v121_v30 = vmul.f32 %v120_v29, %v118_v28 }
 0x18f   :  { %v122_v35 = vsub.f32 %v119_v33, %v121_v30 }
 0x190   :  { %v104_v32 = vpop.permute.xlu0 %103 }
 0x191   :  { %v106_v34 = vmul.f32 %v104_v32, %v101_v31 }
 0x193   :  { %v112_v36 = vsub.f32 %v25_v26, %v106_v34  ;;  %v123_v37 = vmul.f32 %v106_v34, %v101_v31  ;;  %138 = vrot.lane.b32.xlu2 %v106_v34, %s206_s20 }
 0x195   :  { %v124_v38 = vsub.f32 %v122_v35, %v123_v37  ;;  %v117_v39 = vmul.f32 %v115_v27, %v112_v36 }
 0x197   :  { %v129_v41 = vsub.f32 %v124_v38, %v127_v40 }
 0x199   :  { %131 = vrot.lane.b32.xlu1 %v129_v41, %s204_s4 }
 0x1ed   :  { %v139_v45 = vpop.permute.xlu2 %138 }
 0x20b   :  { %v132_v43 = vpop.permute.xlu1 %131 }
 0x20c   :  { %v141_v44 = vsel %vm31_vm1, %v117_v39, %v132_v43 }
 0x20d   :  { %v143_v46 = vsel %vm142_vm3, %v141_v44, %v135_v42 }
 0x20e   :  { %v145_v47 = vsel %vm144_vm4, %v143_v46, %v139_v45 }
 0x20f   :  { %147 = vst.msk [vmem:[#allocation2] sm:$0xff] %vm146_vm5, %v145_v47 }
 0x210   :  { %158 = dma.vmem_to_hbm [thread:$0]  %s154_s21, 128, %s156_s24, [#allocation3]  }
 0x211   :  { %202 = dma.done.wait [#allocation3], 128  }
 0x212   :  { %203 = vsyncadd [#allocation3], 4294967168 }
 0x213   :  { %163 = vsyncpa [#allocation3], 1 }

</bundles_post_ra>
